<compile_context>
chip_gen: v6e
topology: v6e:2x2x1
jax: 0.10.0
libtpu: 0.0.40
codegen_flags: <defaults>
</compile_context>

<pallas_src>
import functools

import jax
import jax.numpy as jnp
from jax.experimental import pallas as pl
from jax.experimental.pallas import tpu as pltpu


def _round_up(x, m):
    return ((x + m - 1) // m) * m


def _linear_kernel(x_ref, w_ref, o_ref):
    # x_ref: (tm, D) streamed activation tile; w_ref: (D, V) VMEM-resident weight;
    # o_ref: (tm, V) output tile.  One MXU matmul per grid step, f32 accumulation.
    o_ref[...] = jnp.dot(
        x_ref[...], w_ref[...], preferred_element_type=jnp.float32
    ).astype(o_ref.dtype)


def prepare_weight(weight, dtype=None):
    """One-time prep of nn.Linear weight (V, D) -> (D, V) (optionally cast).

    Call OUTSIDE the jitted forward: the weight is a constant, so its transpose
    (and cast) should not be re-materialized on every call.  No padding needed:
    the kernel uses full-extent V blocks.
    """
    w = weight.T  # (D, V) so the kernel computes x @ w == x @ weight.T
    if dtype is not None:
        w = w.astype(dtype)
    return w


def _vmem_budget_and_limit():
    """Generation-aware VMEM sizing (v5e/v6e: 128 MiB, v7x: 64 MiB per TC)."""
    try:
        cap = pltpu.get_tpu_info().vmem_capacity_bytes
    except Exception:
        cap = 64 * 1024 * 1024  # conservative fallback (safe on all generations)
    return int(cap * 0.60), int(cap * 0.75)  # (block budget, scoped-vmem limit)


def _is_v5e():
    try:
        kind = jax.devices()[0].device_kind.lower()
    except Exception:
        return False
    return ("v5e" in kind) or ("v5 lite" in kind) or ("v5lite" in kind)


def _block_spec(shape, index_map, buffers=None):
    """BlockSpec with optional explicit buffer count (falls back if unsupported)."""
    if buffers is None:
        return pl.BlockSpec(shape, index_map)
    try:
        return pl.BlockSpec(shape, index_map, pipeline_mode=pl.Buffered(buffers))
    except (TypeError, AttributeError):
        return pl.BlockSpec(shape, index_map)


def _choose_tm(M, D, V, x_item, w_item, o_item, *, tm_max, vmem_budget,
               x_buffers=2, w_buffers=1):
    """Largest row tile (multiple of 8, <= tm_max) fitting the VMEM budget,
    capped so the grid has at least 2 blocks (v7x has 2 TensorCores)."""
    tm = min(tm_max, _round_up(M, 8))
    if M > 8:
        tm = min(tm, _round_up(pl.cdiv(M, 2), 8))

    def footprint(t):
        return (x_buffers * t * D * x_item      # streamed activations
                + 2 * t * V * o_item            # double-buffered output tile
                + w_buffers * D * V * w_item)   # resident weight

    while tm > 8 and footprint(tm) > vmem_budget:
        tm = max(8, _round_up(tm // 2, 8))
    return tm


def ctc_generator_forward(audio_features, w_packed, *, out_dtype=None, tm_max=1024):
    """Bias-free linear: audio_features @ weight.T  (CTC_Generator.forward).

    audio_features: (B, T, D)
    w_packed:       (D, V) from prepare_weight()  (V = num_embeddings + 1)
    out_dtype:      output dtype; default = input dtype.  bf16 recommended for
                    production (f32 MXU accumulation is kept either way).
    returns:        (B, T, V)
    """
    B, T, D = audio_features.shape
    Dw, V = w_packed.shape
    assert Dw == D, (Dw, D)
    if out_dtype is None:
        out_dtype = audio_features.dtype
    M = B * T
    x = audio_features.reshape(M, D)

    x_item = jnp.dtype(audio_features.dtype).itemsize
    w_item = jnp.dtype(w_packed.dtype).itemsize
    o_item = jnp.dtype(out_dtype).itemsize

    vmem_budget, vmem_limit = _vmem_budget_and_limit()
    # v5e: single vst slot + slower HBM -> deeper input buffering helps only
    # once the output tiles are large; never triggers for small V.
    x_buffers = 3 if (_is_v5e() and V >= 1024) else 2

    tm = _choose_tm(M, D, V, x_item, w_item, o_item, tm_max=tm_max,
                    vmem_budget=vmem_budget, x_buffers=x_buffers)
    grid = (pl.cdiv(M, tm),)

    cost = pl.CostEstimate(
        flops=2 * M * D * V,
        transcendentals=0,
        bytes_accessed=M * D * x_item + D * V * w_item + M * V * o_item,
    )

    out = pl.pallas_call(
        _linear_kernel,
        out_shape=jax.ShapeDtypeStruct((M, V), out_dtype),
        grid_spec=pltpu.PrefetchScalarGridSpec(
            num_scalar_prefetch=0,
            grid=grid,
            in_specs=[
                # Streamed activations (optionally 3-deep on v5e).
                _block_spec((tm, D), lambda i: (i, 0),
                            buffers=x_buffers if x_buffers != 2 else None),
                # Weight: constant index_map -> fetched once; single-buffered.
                _block_spec((D, V), lambda i: (0, 0), buffers=1),
            ],
            # Full-extent V in the output block: no padding, no post-kernel slice.
            out_specs=pl.BlockSpec((tm, V), lambda i: (i, 0)),
        ),
        compiler_params=pltpu.CompilerParams(
            dimension_semantics=("parallel",),
            vmem_limit_bytes=vmem_limit,
        ),
        cost_estimate=cost,
    )(x, w_packed)

    return out.reshape(B, T, V)


def init_params(key, d_model, num_embeddings):
    """Deterministic init matching nn.Linear(d, num_embeddings + 1, bias=False)."""
    V = num_embeddings + 1
    bound = 1.0 / jnp.sqrt(jnp.float32(d_model))  # PyTorch kaiming-uniform bound
    weight = jax.random.uniform(
        key, (V, d_model), dtype=jnp.float32, minval=-bound, maxval=bound
    )
    return weight


if __name__ == "__main__":
    key = jax.random.PRNGKey(0)
    k_x, k_w = jax.random.split(key)

    # Small shapes consistent with the module's forward:
    #   batch=2, seq(time)=8, ctc_decoder_input_dim=32, num_embeddings=128 -> V=129
    B, T, D = 2, 8, 32
    NUM_EMBEDDINGS = 128
    V = NUM_EMBEDDINGS + 1

    audio_features = jax.random.normal(k_x, (B, T, D), dtype=jnp.float32)
    weight = init_params(k_w, D, NUM_EMBEDDINGS)  # (V, D), as nn.Linear stores it

    # Plain-JAX reference of the PyTorch semantics.
    ref = jnp.einsum("btd,vd->btv", audio_features, weight)

    # ---- f32 path: tight-fidelity check ------------------------------------
    w_packed_f32 = jax.block_until_ready(prepare_weight(weight))
    fwd_f32 = jax.jit(functools.partial(ctc_generator_forward, out_dtype=jnp.float32))
    out_f32 = jax.block_until_ready(fwd_f32(audio_features, w_packed_f32))
    assert out_f32.shape == (B, T, V), out_f32.shape
    assert jnp.allclose(out_f32, ref, atol=1e-5, rtol=1e-5)

    # ---- bf16 path: recommended production config (halves HBM traffic) -----
    # Upstream should emit bf16 activations directly; the cast here is demo-only.
    x_bf16 = audio_features.astype(jnp.bfloat16)
    w_packed_bf16 = jax.block_until_ready(prepare_weight(weight, dtype=jnp.bfloat16))
    fwd_bf16 = jax.jit(functools.partial(ctc_generator_forward, out_dtype=jnp.bfloat16))
    out_bf16 = jax.block_until_ready(fwd_bf16(x_bf16, w_packed_bf16))
    assert out_bf16.shape == (B, T, V), out_bf16.shape
    # bf16 inputs/stores (f32 MXU accumulation kept) -> looser logit tolerance.
    assert jnp.allclose(out_bf16.astype(jnp.float32), ref, atol=5e-2, rtol=5e-2)

    print("KERNEL_OK")
</pallas_src>

<mosaic_0001>
module attributes {stable_mosaic.version = 11 : i64} {
  func.func @_linear_kernel(%arg0: i32, %arg1: memref<8x32xf32, #tpu.memory_space<vmem>>, %arg2: memref<32x129xf32, #tpu.memory_space<vmem>>, %arg3: memref<8x129xf32, #tpu.memory_space<vmem>>) attributes {dimension_semantics = [#tpu.dimension_semantics<parallel>], iteration_bounds = array<i64: 2>, scalar_prefetch = 0 : i64, scratch_operands = 0 : i64, tpu.core_type = #tpu.core_type<tc>, window_params = [{transform_indices = @transform_0, window_bounds = array<i64: 8, 32>}, {pipeline_mode = #tpu.pipeline_mode<synchronous>, transform_indices = @transform_1, window_bounds = array<i64: 32, 129>}, {transform_indices = @transform_2, window_bounds = array<i64: 8, 129>}]} {
    %c0 = arith.constant 0 : index
    %c0_0 = arith.constant 0 : index
    %0 = vector.load %arg1[%c0, %c0_0] : memref<8x32xf32, #tpu.memory_space<vmem>>, vector<8x32xf32>
    %c0_1 = arith.constant 0 : index
    %c0_2 = arith.constant 0 : index
    %1 = vector.load %arg2[%c0_1, %c0_2] : memref<32x129xf32, #tpu.memory_space<vmem>>, vector<32x129xf32>
    %cst = arith.constant dense<0.000000e+00> : vector<8x129xf32>
    %2 = tpu.matmul %0, %1, %cst {dimension_numbers = #tpu.dot_dimension_numbers<[1], [0], [0], [1], [0, 0, 1, 1], [], []>} : vector<8x32xf32>, vector<32x129xf32>, vector<8x129xf32> -> vector<8x129xf32>
    %c0_3 = arith.constant 0 : index
    %c0_4 = arith.constant 0 : index
    %3 = vector.load %arg3[%c0_3, %c0_4] : memref<8x129xf32, #tpu.memory_space<vmem>>, vector<8x129xf32>
    tpu.vector_store %arg3[%c0_3, %c0_4], %2 {strides = array<i32>} : memref<8x129xf32, #tpu.memory_space<vmem>>, vector<8x129xf32>,
    return
  }
  func.func @transform_0(%arg0: i32) -> (i32, i32) {
    %c0_i32 = arith.constant 0 : i32
    %c0_i32_0 = arith.constant 0 : i32
    return %arg0, %c0_i32 : i32, i32
  }
  func.func @transform_1(%arg0: i32) -> (i32, i32) {
    %c0_i32 = arith.constant 0 : i32
    %c0_i32_0 = arith.constant 0 : i32
    %c0_i32_1 = arith.constant 0 : i32
    return %c0_i32, %c0_i32_0 : i32, i32
  }
  func.func @transform_2(%arg0: i32) -> (i32, i32) {
    %c0_i32 = arith.constant 0 : i32
    %c0_i32_0 = arith.constant 0 : i32
    return %arg0, %c0_i32 : i32, i32
  }
}

</mosaic_0001>

<bundles_post_ra>
// kernel: ctc_generator_forward.1
= control target key start
LH: loop header
LB: loop body
LE: loop exit
PB: predicated region body
PF: predicated region fallthrough
CT: control target
= control target key end

     0   :  { %7 = vsyncpa [#allocation3], 0  ;;  %s739_s0 = inlined_call_operand.hbm [shape: f32[16,32], index: 0, kind: input, shape index: {}]   ;;  %s740_s1 = inlined_call_operand.hbm [shape: f32[32,129], index: 1, kind: input, shape index: {}]   ;;  %s741_s2 = inlined_call_operand.hbm [shape: f32[16,129], index: 2, kind: output, shape index: {}]  }
   0x1   :  { %9 = vsyncpa [#allocation3 + $0x1], 0 }
   0x2   :  { %10 = vsyncpa [#allocation6], 0 }
   0x3   :  { %11 = vsyncpa [#allocation4], 0 }
   0x4   :  { %13 = vsyncpa [#allocation4 + $0x1], 0  ;;  %s578_s9 = smov 0   ;;  %s580_s10 = smov 0  }
   0x5   :  { %s582_s11 = smov 0   ;;  %s584_s12 = smov 0  }
   0x6 LB: > { %s599_s13 = sadd.s32 4294967295, %s555_s12   ;;  %s356_s14 = sadd.s32 4294967294, %s555_s12   ;;  %s555_s12 = sphi %s584_s12, %s763_s12   ;;  %s551_s11 = sphi %s582_s11, %s762_s11   ;;  %s547_s10 = sphi %s580_s10, %s761_s10   ;;  %s543_s9 = sphi %s578_s9, %s760_s9  }
   0x7   : > { %p39_p0 = scmp.ne.s32.totalorder %s547_s10, %s543_s9  ;;  %p742_p1 = scmp.eq.s32.totalorder %s599_s13, 0 }
   0x8   : > { %p90_p3 = scmp.eq.s32.totalorder %s356_s14, 1  ;;  %p357_p5 = scmp.ge.s32.totalorder %s555_s12, 1 }
   0x9   : > { %p608_p4 = por %p742_p1, %p39_p0  ;;  %p97_p7 = scmp.lt.s32.totalorder %s555_s12, 3 }
   0xa   : > { %p613_p6 = por %p90_p3, %p39_p0  ;;  %s557_s18 = smov [#allocation5]  }
   0xb   : > { %s746_s15 = scalar_select %p608_p4, 1, 0 }
   0xc   : > { %s747_s16 = scalar_select %p613_p6, 1, 0 }
   0xd   : > { %p618_p8 = pnand %p357_p5, %p97_p7  ;;  %s109_s19 = sshll.u32 %s557_s18, 4  ;;  %s110_s19 = int_to_ptr.vmem [resolvable:$true] %s109_s19 }
   0xe   : > { %s632_s21 = sadd.s32 1, %s555_s12   ;;  %s26_s22 = sadd.s32 1, %s551_s11 }
   0xf   : > { %s748_s17 = scalar_select %p618_p8, 1, 0 }
  0x10   : > { %p381_p9 = pneg %p618_p8  ;;  %s23_s23 = ssub.s32 %s555_s12, %s632_s21 }
  0x11   : > { %s444_s24 = scalar_lea.vmem %s110_s19, 1024  ;;  %p452_p5 = scmp.lt.s32.totalorder %s110_s19, %s110_s19 }
  0x12   : > { %p627_p11 = pnand %p381_p9, %p742_p1  ;;  %p445_p13 = scmp.ne.s32.totalorder %s110_s19, %s444_s24 }
  0x13   : > { %p453_p7 = scmp.lt.s32.totalorder %s444_s24, %s444_s24 }
  0x14   : > { %p435_p12 = pneg %p627_p11 }
  0x15   : > { %p454_p10 = por %p453_p7, %p452_p5 }
  0x16   : > { %p447_p0 = pnand %p445_p13, %p435_p12 }
  0x18   : > { %p448_p3 = pneg %p447_p0 }
  0x1a   : > { %p455_p2 = pnand %p454_p10, %p448_p3 }
  0x1c   : > { %458 = shalt.err (!%p455_p2)
}
  0x1d   : > { %s558_s25 = smov 256   ;;  %s559_s26 = smov 16  }
  0x1e   : > { %384 = dma.hbm_to_vmem [thread:$0]  (!%p627_p11), %s740_s1, 1024, %s110_s19, [#allocation6], %s558_s25, %s558_s25, %s559_s26  }
  0x1f   : > { %p24_p9 = scmp.eq.s32.totalorder %s23_s23, 0  ;;  %p33_p12 = scmp.ne.s32.totalorder %s551_s11, %s547_s10 }
  0x20   : > { %p34_p10 = scmp.eq.s32.totalorder %s555_s12, 0  ;;  %p394_p2 = scmp.lt.s32.totalorder %s555_s12, 2 }
  0x21   : > { %s649_s29 = scalar_select %p24_p9, %s551_s11, %s26_s22  }
  0x22   : > { %p35_p13 = por %p34_p10, %p33_p12  ;;  %p750_p0 = scmp.eq.s32.totalorder %s599_s13, 1 }
  0x23   : > { %s123_s3 = sand.u32 1, %s551_s11   ;;  %s361_s4 = sshll.u32 %s555_s12, 7 }
  0x24   : > { %p653_p3 = por %p750_p0, %p33_p12  ;;  %s360_s5 = sshll.u32 %s123_s3, 3 }
  0x25   : > { %s662_s8 = scalar_lea.hbm %s739_s0, %s361_s4  ;;  %s127_s14 = scalar_lea.vmem [#allocation2], %s360_s5 }
  0x26   : > { %s751_s30 = scalar_select %p653_p3, 1, 0 }
  0x27   : > { %s134_s18 = sshll.u32 %s127_s14, 4  ;;  %p664_p11 = pnand %p394_p2, %p35_p13  ;;  %s135_s18 = int_to_ptr.vmem [resolvable:$true] %s134_s18 }
  0x28   : > { %s124_s20 = scalar_lea.sflag [#allocation3], %s123_s3  ;;  %s459_s22 = scalar_lea.hbm %s662_s8, 128 }
  0x29   : > { %p460_p5 = scmp.ne.s32.totalorder %s662_s8, %s459_s22  ;;  %p461_p7 = pneg %p664_p11 }
  0x2a   : > { %s464_s25 = scalar_lea.hbm %s739_s0, 256  ;;  %p465_p10 = scmp.lt.s32.totalorder %s662_s8, %s739_s0 }
  0x2b   : > { %p462_p9 = pnand %p461_p7, %p460_p5  ;;  %p466_p2 = scmp.lt.s32.totalorder %s464_s25, %s459_s22 }
  0x2d   : > { %p463_p12 = pneg %p462_p9  ;;  %p467_p13 = por %p466_p2, %p465_p10 }
  0x2f   : > { %p468_p0 = pnand %p467_p13, %p463_p12 }
  0x31   : > { %471 = shalt.err (!%p468_p0)
}
  0x32   : > { %s472_s28 = scalar_lea.vmem %s135_s18, 128  ;;  %s560_s3 = smov [#allocation2]  }
  0x33   : > { %p473_p1 = scmp.ne.s32.totalorder %s135_s18, %s472_s28  ;;  %s477_s4 = sshll.u32 %s560_s3, 4  ;;  %s478_s4 = int_to_ptr.vmem [resolvable:$false] %s477_s4 }
  0x34   : > { %s479_s5 = scalar_lea.vmem %s478_s4, 256  ;;  %p480_p5 = scmp.lt.s32.totalorder %s135_s18, %s478_s4 }
  0x35   : > { %p475_p6 = pnand %p473_p1, %p461_p7  ;;  %p481_p9 = scmp.lt.s32.totalorder %s479_s5, %s472_s28 }
  0x37   : > { %p476_p3 = pneg %p475_p6  ;;  %p482_p4 = por %p481_p9, %p480_p5 }
  0x39   : > { %p483_p8 = pnand %p482_p4, %p476_p3 }
  0x3b   : > { %486 = shalt.err (!%p483_p8)
}
  0x3c   : > { %388 = dma.hbm_to_vmem [thread:$0]  (!%p664_p11), %s662_s8, 128, %s135_s18, %s124_s20  }
  0x3d   : > { %p753_p12 = scmp.ne.s32.totalorder %s748_s17, 0 }
  0x3e   : > { %s685_s6 = sand.u32 (!%p753_p12), 1, %s547_s10   ;;  %p754_p1 = scmp.ne.s32.totalorder (!%p753_p12), %s746_s15, 0 }
  0x3f   : > { %143 = sbr.rel (%p753_p12) target bundleno = 289 (0x121), region = 28  ;;  %s363_s7 = sshll.u32 (!%p753_p12), %s685_s6, 3 }
  0x40   : > { %s146_s14 = scalar_lea.sflag (!%p753_p12), [#allocation3], %s685_s6  ;;  %s149_s22 = scalar_lea.vmem (!%p753_p12), [#allocation2], %s363_s7 }
  0x44   : > { %530 = dma.done.wait (%p754_p1), %s146_s14, 128  }
  0x45   : > { %532 = vsyncadd (%p754_p1), %s146_s14, 4294967168  ;;  %p755_p4 = scmp.eq.s32.totalorder %s599_s13, 0 }
  0x47   : > { %534 = dma.done.wait (%p755_p4), [#allocation6], 1024   ;;  %p756_p6 = pmov %p755_p4 }
  0x48   : > { %v561_v0 = vmov 0.0   ;;  %v182_v1 = vld [vmem:[#allocation5 + $0x38] sm:$0xff]  ;;  %v181_v2 = vld [vmem:[#allocation5 + $0x30] sm:$0xff]  ;;  %v180_v3 = vld [vmem:[#allocation5 + $0x28] sm:$0xff]  ;;  %vm183_vm0 = vcmask 261120   ;;  %s365_s15 = sshll.u32 %s685_s6, 4 }
  0x49   : > { %536 = vsyncadd (%p756_p6), [#allocation6], 4294966272  ;;  %251 = vmatprep.mubr.f32.mxu0 %v561_v0  ;;  %211 = vmatprep.subr.mxu0 %v182_v1  ;;  %v179_v4 = vld [vmem:[#allocation5 + $0x20] sm:$0xff]  ;;  %v178_v5 = vld [vmem:[#allocation5 + $0x18] sm:$0xff]  ;;  %s173_s17 = scalar_lea.vmem [#allocation7], %s365_s15  ;;  %s372_s18 = sshll.u32 %s599_s13, 8 }
  0x4a   : > { %212 = vmatpush1.msra.mxu0 %v181_v2  ;;  %v177_v6 = vld [vmem:[#allocation5 + $0x10] sm:$0xff]  ;;  %v176_v7 = vld [vmem:[#allocation5 + $0x8] sm:$0xff]  ;;  %v175_v8 = vld [vmem:[#allocation5] sm:$0xff]  ;;  %s276_s8 = sshll.u32 %s173_s17, 4  ;;  %vm259_vm1 = vcmask 7168   ;;  %s274_s23 = scalar_lea.hbm %s741_s2, %s372_s18  ;;  %s699_s8 = int_to_ptr.vmem [resolvable:$true] %s276_s8 }
  0x4b   : > { %213 = vmatprep.subr.mxu0 %v180_v3  ;;  %v174_v9 = vld [vmem:[%s149_s22] sm:$0xff]  ;;  %s262_s24 = scalar_lea.sflag [#allocation4], %s685_s6  ;;  %s487_s25 = scalar_lea.vmem %s699_s8, 256 }
  0x4c   : > { %214 = vmatpush1.msra.mxu0 %v179_v4  ;;  %p488_p8 = scmp.ne.s32.totalorder %s699_s8, %s487_s25  ;;  %p757_p3 = scmp.ne.s32.totalorder %s751_s30, 0 }
  0x4d   : > { %215 = vmatprep.subr.mxu0 %v178_v5  ;;  %s562_s13 = smov [#allocation7]  }
  0x4e   : > { %216 = vmatpush1.msra.mxu0 %v177_v6  ;;  %p489_p11 = pnand %p488_p8, %p757_p3  ;;  %s491_s26 = sshll.u32 %s562_s13, 4  ;;  %s492_s26 = int_to_ptr.vmem [resolvable:$false] %s491_s26 }
  0x4f   : > { %217 = vmatprep.subr.mxu0 %v176_v7  ;;  %s493_s27 = scalar_lea.vmem %s492_s26, 512  ;;  %p494_p10 = scmp.lt.s32.totalorder %s699_s8, %s492_s26 }
  0x50   : > { %218 = vmatpush1.msra.mxu0 %v175_v8  ;;  %p490_p7 = pneg %p489_p11  ;;  %p495_p2 = scmp.lt.s32.totalorder %s493_s27, %s487_s25 }
  0x51   : > { %366 = vmatmul.mubr.msk.f32.vlgmr.msra.gmra.mxu0 %vm183_vm0, %v174_v9 }
  0x52   : > { %p496_p13 = por %p495_p2, %p494_p10 }
  0x54   : > { %p497_p0 = pnand %p496_p13, %p490_p7 }
 0x111   : > { %v253_v10 = vpop.f32.mrf.mxu0 }
 0x112   : > { %258 = vst [vmem:[%s173_s17] sm:$0xff] %v253_v10 }
 0x113   : > { %v255_v11 = vpop.f32.mrf.mxu0 }
 0x114   : > { %260 = vst.msk [vmem:[%s173_s17 + $0x8] sm:$0xff] %vm259_vm1, %v255_v11 }
 0x115   : > { %500 = shalt.err (!%p497_p0)
}
 0x116   : > { %s501_s28 = scalar_lea.hbm %s274_s23, 256  ;;  %s505_s5 = scalar_lea.hbm %s741_s2, 512 }
 0x117   : > { %p502_p5 = scmp.ne.s32.totalorder %s274_s23, %s501_s28  ;;  %p506_p1 = scmp.lt.s32.totalorder %s274_s23, %s741_s2 }
 0x118   : > { %p507_p4 = scmp.lt.s32.totalorder %s505_s5, %s501_s28 }
 0x119   : > { %p503_p9 = pnand %p502_p5, %p757_p3 }
 0x11a   : > { %p508_p6 = por %p507_p4, %p506_p1 }
 0x11b   : > { %p504_p12 = pneg %p503_p9 }
 0x11d   : > { %p509_p8 = pnand %p508_p6, %p504_p12 }
 0x11f   : > { %512 = shalt.err (!%p509_p8)
}
 0x120   : > { %379 = dma.vmem_to_hbm [thread:$0]  (%p757_p3), %s699_s8, 256, %s274_s23, %s262_s24  }
 0x121 PF: > { %s288_s14 = sand.u32 1, %s543_s9   ;;  %p758_p11 = scmp.ne.s32.totalorder %s747_s16, 0 }
 0x122   : > { %p759_p7 = scmp.ge.s32.totalorder %s555_s12, 2  ;;  %s289_s22 = scalar_lea.sflag [#allocation4], %s288_s14 }
 0x124   : > { %p390_p10 = pnand %p759_p7, %p758_p11 }
 0x126   : > { %p391_p2 = pneg %p390_p10 }
 0x128   : > { %538 = dma.done.wait (%p391_p2), %s289_s22, 256  }
 0x129   : > { %540 = vsyncadd (%p391_p2), %s289_s22, 4294967040  ;;  %p16_p13 = scmp.ge.s32.totalorder %s632_s21, 4   ;;  %s760_s9 = smov %s547_s10 }
 0x12a   : > { %s761_s10 = smov %s551_s11  ;;  %s762_s11 = smov %s649_s29 }
 0x12b   : > { %s763_s12 = smov %s632_s21  ;;  %18 = sbr.rel (!%p16_p13) target bundleno = 6 (0x6), region = 77 }
 0x130   :  { %294 = vsyncpa [#allocation3], 1 }
 0x131   :  { %296 = vsyncpa [#allocation3 + $0x1], 1 }
 0x132   :  { %297 = vsyncpa [#allocation6], 1 }
 0x133   :  { %298 = vsyncpa [#allocation4], 1 }
 0x134   :  { %300 = vsyncpa [#allocation4 + $0x1], 1 }

</bundles_post_ra>
